<compile_context>
chip_gen: v5e
topology: v5e:2x2
jax: 0.10.0
libtpu: 0.0.40
codegen_flags: <defaults>
</compile_context>

<pallas_src>
import functools

import jax
import jax.numpy as jnp
from jax import lax
from jax.experimental import pallas as pl
from jax.experimental.pallas import tpu as pltpu


OUT_LANES = 128  # lane-dense packed output slab: [y | new_state | zero pad]


# ----------------------------------------------------------------------------
# Pallas kernel: whole-sequence GRU recurrence (state carried in VMEM scratch)
# ----------------------------------------------------------------------------
def _gru_seq_kernel(hidden_dim, out_dim,
                    a0_ref,        # (bb, H)      initial state block
                    x_ref,         # (1, bb, I)   input block for step t
                    w_a_ref,       # (H, 2H)      fused [relevance_H | update]   (a operand)
                    w_x_ref,       # (I, 3H)      fused [relevance_H | update | w_in_H] (x operand)
                    w_ia_ref,      # (H, H)       w_in a-side (first H output cols)
                    w_y_ref,       # (H, 128)     packed [W_y | I_H | 0]
                    b_rui_ref,     # (1, 3H)      fused biases [b_r_H | b_u | b_i_H]
                    b_y_ref,       # (1, 128)     packed [b_y | 0]
                    out_ref,       # (1, bb, 128) packed output slab for step t
                    state_ref):    # VMEM scratch (bb, H), carried across time
    H, O = hidden_dim, out_dim
    t = pl.program_id(1)

    @pl.when(t == 0)
    def _():
        state_ref[...] = a0_ref[...].astype(jnp.float32)

    a = state_ref[...]                        # (bb, H) carried state, f32
    x = x_ref[0]                              # (bb, I)

    def dot(v, w_ref):
        # Cast MXU operands to the stored weight dtype (f32 or bf16);
        # always accumulate in f32.
        return jnp.dot(v.astype(w_ref.dtype), w_ref[...],
                       preferred_element_type=jnp.float32)

    # Fused x-side contributions + biases: [gr_x | gu_x | cand_x]  -> (bb, 3H)
    xw = dot(x, w_x_ref) + b_rui_ref[...]
    # Fused a-side gate contributions:      [gr_a | gu_a]           -> (bb, 2H)
    aw = dot(a, w_a_ref)

    gates = jax.nn.sigmoid(aw + xw[:, :2 * H])      # (bb, 2H)
    gr = gates[:, :H]                               # relevance gate
    gu = gates[:, H:]                               # update gate

    ar = gr * a
    cand = jnp.tanh(dot(ar, w_ia_ref) + xw[:, 2 * H:])   # (bb, H)

    new_state = gu * cand + (1.0 - gu) * a          # (bb, H)
    state_ref[...] = new_state                      # carry to step t+1

    # Packed output head: one dot emits [y_pre | new_state | 0] lane-dense.
    z = dot(new_state, w_y_ref) + b_y_ref[...]      # (bb, 128)
    lane = lax.broadcasted_iota(jnp.int32, z.shape, 1)
    out = jnp.where(lane < O, jnp.maximum(z, 0.0), z)   # relu only on y lanes
    out_ref[0] = out.astype(out_ref.dtype)


# ----------------------------------------------------------------------------
# Wrapper: weight fusion / packing + pallas_call over (batch_blocks, T) grid
# ----------------------------------------------------------------------------
def _build_fused_params(params, *, in_dim, hidden_dim, out_dim, weight_dtype):
    H, I, O = hidden_dim, in_dim, out_dim
    assert O + H <= OUT_LANES

    def split_T(w, keep_out=None):
        # nn.Linear stores (out, in); forward is x @ W.T.  Pre-transpose to
        # (in, out), optionally keep only the first `keep_out` output columns
        # (the only ones the cell consumes), and split the `in` axis into the
        # [a | x] halves so the concat becomes two matmuls.
        wt = w.T
        if keep_out is not None:
            wt = wt[:, :keep_out]
        return wt[:H, :], wt[H:, :]

    wr_a, wr_x = split_T(params["gate_relevance_w"], keep_out=H)  # (H,H),(I,H)
    wu_a, wu_x = split_T(params["gate_update_w"])                 # (H,H),(I,H)
    wi_a, wi_x = split_T(params["w_in_w"], keep_out=H)            # (H,H),(I,H)
    w_y = params["w_y_w"].T                                       # (H, O)

    w_a = jnp.concatenate([wr_a, wu_a], axis=1)                   # (H, 2H)
    w_x = jnp.concatenate([wr_x, wu_x, wi_x], axis=1)             # (I, 3H)

    b_rui = jnp.concatenate([params["gate_relevance_b"][:H],
                             params["gate_update_b"],
                             params["w_in_b"][:H]]).reshape(1, 3 * H)

    # Packed 128-lane output head: [W_y | I_H | 0] so one dot emits both the
    # output head pre-activation and the new state in a lane-dense slab.
    w_y_packed = jnp.zeros((H, OUT_LANES), jnp.float32)
    w_y_packed = w_y_packed.at[:, :O].set(w_y)
    w_y_packed = w_y_packed.at[:, O:O + H].set(jnp.eye(H, dtype=jnp.float32))
    b_y_packed = jnp.zeros((1, OUT_LANES), jnp.float32).at[0, :O].set(
        params["w_y_b"])

    wd = weight_dtype
    return dict(w_a=w_a.astype(wd), w_x=w_x.astype(wd),
                w_ia=wi_a.astype(wd), w_y=w_y_packed.astype(wd),
                b_rui=b_rui.astype(jnp.float32),
                b_y=b_y_packed.astype(jnp.float32))


def gru_forward_seq(a0, xs, params, *, in_dim, hidden_dim, out_dim,
                    batch_block=8, weight_dtype=jnp.float32):
    """Run the GRU cell over a whole sequence in ONE pallas_call.

    a0: (B, H) initial hidden states (B independent sequences share weights).
    xs: (T, B, I) inputs.
    Returns (ys (T, B, O), final_state (B, H)).
    """
    T, B, I = xs.shape
    H, O = hidden_dim, out_dim
    assert I == in_dim and a0.shape == (B, H)
    assert B % batch_block == 0 and batch_block % 8 == 0  # sublane alignment
    nb = B // batch_block

    fp = _build_fused_params(params, in_dim=in_dim, hidden_dim=hidden_dim,
                             out_dim=out_dim, weight_dtype=weight_dtype)

    const = lambda b, t: (0, 0)   # resident weights/biases: DMA'd once

    out_slab = pl.pallas_call(
        functools.partial(_gru_seq_kernel, H, O),
        out_shape=jax.ShapeDtypeStruct((T, B, OUT_LANES), jnp.float32),
        grid_spec=pltpu.PrefetchScalarGridSpec(
            num_scalar_prefetch=0,
            grid=(nb, T),                                   # time innermost
            in_specs=[
                pl.BlockSpec((batch_block, H), lambda b, t: (b, 0)),        # a0
                pl.BlockSpec((1, batch_block, I), lambda b, t: (t, b, 0)),  # xs
                pl.BlockSpec((H, 2 * H), const),            # w_a   (resident)
                pl.BlockSpec((I, 3 * H), const),            # w_x   (resident)
                pl.BlockSpec((H, H), const),                # w_ia  (resident)
                pl.BlockSpec((H, OUT_LANES), const),        # w_y   (resident)
                pl.BlockSpec((1, 3 * H), const),            # b_rui (resident)
                pl.BlockSpec((1, OUT_LANES), const),        # b_y   (resident)
            ],
            out_specs=pl.BlockSpec((1, batch_block, OUT_LANES),
                                   lambda b, t: (t, b, 0)),
            scratch_shapes=[pltpu.VMEM((batch_block, H), jnp.float32)],
        ),
        compiler_params=pltpu.CompilerParams(
            dimension_semantics=("parallel", "arbitrary")),
    )(a0, xs, fp["w_a"], fp["w_x"], fp["w_ia"], fp["w_y"],
      fp["b_rui"], fp["b_y"])

    ys = out_slab[:, :, :O]                 # (T, B, O)
    states = out_slab[:, :, O:O + H]        # per-step states (T, B, H)
    return ys, states[-1]


# ----------------------------------------------------------------------------
# Deterministic parameter init (matches nn.Linear shapes from __init__)
# ----------------------------------------------------------------------------
def init_params(key, in_dim, hidden_dim, out_dim):
    C = hidden_dim + in_dim
    ks = jax.random.split(key, 8)

    def linear(kw, kb, out_f, in_f):
        bound = 1.0 / jnp.sqrt(in_f)
        w = jax.random.uniform(kw, (out_f, in_f), jnp.float32, -bound, bound)
        b = jax.random.uniform(kb, (out_f,), jnp.float32, -bound, bound)
        return w, b

    p = {}
    p["w_in_w"], p["w_in_b"] = linear(ks[0], ks[1], C, C)
    p["w_y_w"], p["w_y_b"] = linear(ks[2], ks[3], out_dim, hidden_dim)
    p["gate_update_w"], p["gate_update_b"] = linear(ks[4], ks[5], hidden_dim, C)
    p["gate_relevance_w"], p["gate_relevance_b"] = linear(ks[6], ks[7], C, C)
    return p


# ----------------------------------------------------------------------------
# Pure-JAX reference of the same (repaired) semantics, for a sanity check.
# ----------------------------------------------------------------------------
def gru_reference_step(a, x, p, hidden_dim):
    hp = lax.Precision.HIGHEST
    ax = jnp.concatenate([a, x], axis=-1)
    gr = jax.nn.sigmoid(jnp.dot(ax, p["gate_relevance_w"].T, precision=hp)
                        + p["gate_relevance_b"])
    ar = gr[:, :hidden_dim] * a
    arx = jnp.concatenate([ar, x], axis=-1)
    cand = jnp.tanh(jnp.dot(arx, p["w_in_w"].T, precision=hp)
                    + p["w_in_b"])[:, :hidden_dim]
    gu = jax.nn.sigmoid(jnp.dot(ax, p["gate_update_w"].T, precision=hp)
                        + p["gate_update_b"])
    new_state = gu * cand + (1.0 - gu) * a
    y = jax.nn.relu(jnp.dot(new_state, p["w_y_w"].T, precision=hp)
                    + p["w_y_b"])
    return y, new_state


def gru_reference_seq(a0, xs, p, hidden_dim):
    def step(a, x):
        y, s = gru_reference_step(a, x, p, hidden_dim)
        return s, y
    final, ys = lax.scan(step, a0, xs)
    return ys, final


if __name__ == "__main__":
    in_dim, hidden_dim, out_dim = 16, 32, 8
    seq_len, batch = 8, 16

    key = jax.random.PRNGKey(0)
    k_param, k_x = jax.random.split(key)
    params = init_params(k_param, in_dim, hidden_dim, out_dim)

    xs = jax.random.normal(k_x, (seq_len, batch, in_dim), jnp.float32)
    a0 = jnp.zeros((batch, hidden_dim), jnp.float32)   # Cell.init_state per row

    # f32 weights: exact semantics of the (repaired) module.
    ys, final_state = gru_forward_seq(
        a0, xs, params, in_dim=in_dim, hidden_dim=hidden_dim,
        out_dim=out_dim, batch_block=8, weight_dtype=jnp.float32)
    jax.block_until_ready((ys, final_state))

    ys_ref, final_ref = gru_reference_seq(a0, xs, params, hidden_dim)
    assert ys.shape == (seq_len, batch, out_dim)
    assert final_state.shape == (batch, hidden_dim)
    assert jnp.allclose(ys, ys_ref, atol=2e-3, rtol=2e-3), \
        float(jnp.max(jnp.abs(ys - ys_ref)))
    assert jnp.allclose(final_state, final_ref, atol=2e-3, rtol=2e-3), \
        float(jnp.max(jnp.abs(final_state - final_ref)))

    # bf16 MXU operands (v6e/v7x-friendly); f32 accumulation + gating math.
    ys_bf, final_bf = gru_forward_seq(
        a0, xs, params, in_dim=in_dim, hidden_dim=hidden_dim,
        out_dim=out_dim, batch_block=8, weight_dtype=jnp.bfloat16)
    jax.block_until_ready((ys_bf, final_bf))
    assert jnp.allclose(ys_bf, ys_ref, atol=1.5e-1, rtol=1.5e-1)
    assert jnp.allclose(final_bf, final_ref, atol=1.5e-1, rtol=1.5e-1)

    print("KERNEL_OK")
</pallas_src>

<mosaic_0001>
module attributes {stable_mosaic.version = 11 : i64} {
  func.func @_gru_seq_kernel(%arg0: i32, %arg1: i32, %arg2: memref<8x32xf32, #tpu.memory_space<vmem>>, %arg3: memref<1x8x16xf32, #tpu.memory_space<vmem>>, %arg4: memref<32x64xf32, #tpu.memory_space<vmem>>, %arg5: memref<16x96xf32, #tpu.memory_space<vmem>>, %arg6: memref<32x32xf32, #tpu.memory_space<vmem>>, %arg7: memref<32x128xf32, #tpu.memory_space<vmem>>, %arg8: memref<1x96xf32, #tpu.memory_space<vmem>>, %arg9: memref<1x128xf32, #tpu.memory_space<vmem>>, %arg10: memref<1x8x128xf32, #tpu.memory_space<vmem>>, %arg11: memref<8x32xf32, #tpu.memory_space<vmem>>) attributes {dimension_semantics = [#tpu.dimension_semantics<parallel>, #tpu.dimension_semantics<arbitrary>], iteration_bounds = array<i64: 2, 8>, scalar_prefetch = 0 : i64, scratch_operands = 1 : i64, tpu.core_type = #tpu.core_type<tc>, window_params = [{transform_indices = @transform_0, window_bounds = array<i64: 8, 32>}, {transform_indices = @transform_1, window_bounds = array<i64: 1, 8, 16>}, {pipeline_mode = #tpu.pipeline_mode<synchronous>, transform_indices = @transform_2, window_bounds = array<i64: 32, 64>}, {pipeline_mode = #tpu.pipeline_mode<synchronous>, transform_indices = @transform_3, window_bounds = array<i64: 16, 96>}, {pipeline_mode = #tpu.pipeline_mode<synchronous>, transform_indices = @transform_4, window_bounds = array<i64: 32, 32>}, {pipeline_mode = #tpu.pipeline_mode<synchronous>, transform_indices = @transform_5, window_bounds = array<i64: 32, 128>}, {pipeline_mode = #tpu.pipeline_mode<synchronous>, transform_indices = @transform_6, window_bounds = array<i64: 1, 96>}, {pipeline_mode = #tpu.pipeline_mode<synchronous>, transform_indices = @transform_7, window_bounds = array<i64: 1, 128>}, {transform_indices = @transform_8, window_bounds = array<i64: 1, 8, 128>}]} {
    %c0_i32 = arith.constant 0 : i32
    %0 = arith.cmpi eq, %arg1, %c0_i32 : i32
    %1 = arith.extui %0 : i1 to i32
    %c0_i32_0 = arith.constant 0 : i32
    %2 = arith.cmpi ne, %1, %c0_i32_0 : i32
    scf.if %2 {
      %c0_28 = arith.constant 0 : index
      %c0_29 = arith.constant 0 : index
      %48 = vector.load %arg2[%c0_28, %c0_29] : memref<8x32xf32, #tpu.memory_space<vmem>>, vector<8x32xf32>
      %c0_30 = arith.constant 0 : index
      %c0_31 = arith.constant 0 : index
      %49 = vector.load %arg11[%c0_30, %c0_31] : memref<8x32xf32, #tpu.memory_space<vmem>>, vector<8x32xf32>
      tpu.vector_store %arg11[%c0_30, %c0_31], %48 {strides = array<i32>} : memref<8x32xf32, #tpu.memory_space<vmem>>, vector<8x32xf32>,
    } else {
    }
    %c0 = arith.constant 0 : index
    %c0_1 = arith.constant 0 : index
    %3 = vector.load %arg11[%c0, %c0_1] : memref<8x32xf32, #tpu.memory_space<vmem>>, vector<8x32xf32>
    %c0_2 = arith.constant 0 : index
    %c0_3 = arith.constant 0 : index
    %c0_4 = arith.constant 0 : index
    %4 = vector.load %arg3[%c0_2, %c0_3, %c0_4] : memref<1x8x16xf32, #tpu.memory_space<vmem>>, vector<1x8x16xf32>
    %5 = vector.shape_cast %4 : vector<1x8x16xf32> to vector<8x16xf32>
    %c0_5 = arith.constant 0 : index
    %c0_6 = arith.constant 0 : index
    %6 = vector.load %arg5[%c0_5, %c0_6] : memref<16x96xf32, #tpu.memory_space<vmem>>, vector<16x96xf32>
    %cst = arith.constant dense<0.000000e+00> : vector<8x96xf32>
    %7 = tpu.matmul %5, %6, %cst {dimension_numbers = #tpu.dot_dimension_numbers<[1], [0], [0], [1], [0, 0, 1, 1], [], []>} : vector<8x16xf32>, vector<16x96xf32>, vector<8x96xf32> -> vector<8x96xf32>
    %c0_7 = arith.constant 0 : index
    %c0_8 = arith.constant 0 : index
    %8 = vector.load %arg8[%c0_7, %c0_8] : memref<1x96xf32, #tpu.memory_space<vmem>>, vector<1x96xf32>
    %9 = vector.broadcast %8 : vector<1x96xf32> to vector<8x96xf32>
    %10 = arith.addf %7, %9 : vector<8x96xf32>
    %c0_9 = arith.constant 0 : index
    %c0_10 = arith.constant 0 : index
    %11 = vector.load %arg4[%c0_9, %c0_10] : memref<32x64xf32, #tpu.memory_space<vmem>>, vector<32x64xf32>
    %cst_11 = arith.constant dense<0.000000e+00> : vector<8x64xf32>
    %12 = tpu.matmul %3, %11, %cst_11 {dimension_numbers = #tpu.dot_dimension_numbers<[1], [0], [0], [1], [0, 0, 1, 1], [], []>} : vector<8x32xf32>, vector<32x64xf32>, vector<8x64xf32> -> vector<8x64xf32>
    %13 = vector.extract_strided_slice %10 {offsets = [0, 0], sizes = [8, 64], strides = [1, 1]} : vector<8x96xf32> to vector<8x64xf32>
    %14 = arith.addf %12, %13 : vector<8x64xf32>
    %15 = arith.negf %14 : vector<8x64xf32>
    %16 = math.exp %15 : vector<8x64xf32>
    %cst_12 = arith.constant 1.000000e+00 : f32
    %17 = vector.broadcast %cst_12 : f32 to vector<8x64xf32>
    %18 = arith.addf %17, %16 : vector<8x64xf32>
    %19 = arith.divf %17, %18 : vector<8x64xf32>
    %20 = vector.extract_strided_slice %19 {offsets = [0, 0], sizes = [8, 32], strides = [1, 1]} : vector<8x64xf32> to vector<8x32xf32>
    %21 = vector.extract_strided_slice %19 {offsets = [0, 32], sizes = [8, 32], strides = [1, 1]} : vector<8x64xf32> to vector<8x32xf32>
    %22 = arith.mulf %20, %3 : vector<8x32xf32>
    %c0_13 = arith.constant 0 : index
    %c0_14 = arith.constant 0 : index
    %23 = vector.load %arg6[%c0_13, %c0_14] : memref<32x32xf32, #tpu.memory_space<vmem>>, vector<32x32xf32>
    %cst_15 = arith.constant dense<0.000000e+00> : vector<8x32xf32>
    %24 = tpu.matmul %22, %23, %cst_15 {dimension_numbers = #tpu.dot_dimension_numbers<[1], [0], [0], [1], [0, 0, 1, 1], [], []>} : vector<8x32xf32>, vector<32x32xf32>, vector<8x32xf32> -> vector<8x32xf32>
    %25 = vector.extract_strided_slice %10 {offsets = [0, 64], sizes = [8, 32], strides = [1, 1]} : vector<8x96xf32> to vector<8x32xf32>
    %26 = arith.addf %24, %25 : vector<8x32xf32>
    %27 = math.tanh %26 : vector<8x32xf32>
    %28 = arith.mulf %21, %27 : vector<8x32xf32>
    %cst_16 = arith.constant 1.000000e+00 : f32
    %29 = vector.broadcast %cst_16 : f32 to vector<8x32xf32>
    %30 = arith.subf %29, %21 : vector<8x32xf32>
    %31 = arith.mulf %30, %3 : vector<8x32xf32>
    %32 = arith.addf %28, %31 : vector<8x32xf32>
    %c0_17 = arith.constant 0 : index
    %c0_18 = arith.constant 0 : index
    %33 = vector.load %arg11[%c0_17, %c0_18] : memref<8x32xf32, #tpu.memory_space<vmem>>, vector<8x32xf32>
    tpu.vector_store %arg11[%c0_17, %c0_18], %32 {strides = array<i32>} : memref<8x32xf32, #tpu.memory_space<vmem>>, vector<8x32xf32>,
    %c0_19 = arith.constant 0 : index
    %c0_20 = arith.constant 0 : index
    %34 = vector.load %arg7[%c0_19, %c0_20] : memref<32x128xf32, #tpu.memory_space<vmem>>, vector<32x128xf32>
    %cst_21 = arith.constant dense<0.000000e+00> : vector<8x128xf32>
    %35 = tpu.matmul %32, %34, %cst_21 {dimension_numbers = #tpu.dot_dimension_numbers<[1], [0], [0], [1], [0, 0, 1, 1], [], []>} : vector<8x32xf32>, vector<32x128xf32>, vector<8x128xf32> -> vector<8x128xf32>
    %c0_22 = arith.constant 0 : index
    %c0_23 = arith.constant 0 : index
    %36 = vector.load %arg9[%c0_22, %c0_23] : memref<1x128xf32, #tpu.memory_space<vmem>>, vector<1x128xf32>
    %37 = vector.broadcast %36 : vector<1x128xf32> to vector<8x128xf32>
    %38 = arith.addf %35, %37 : vector<8x128xf32>
    %39 = tpu.iota {dimensions = array<i32: 1>} : vector<8x128xi32>
    %c8_i32 = arith.constant 8 : i32
    %40 = vector.broadcast %c8_i32 : i32 to vector<8x128xi32>
    %41 = arith.cmpi slt, %39, %40 : vector<8x128xi32>
    %cst_24 = arith.constant 0.000000e+00 : f32
    %42 = vector.broadcast %cst_24 : f32 to vector<8x128xf32>
    %43 = arith.maximumf %38, %42 : vector<8x128xf32>
    %44 = arith.select %41, %43, %38 : vector<8x128xi1>, vector<8x128xf32>
    %c0_25 = arith.constant 0 : index
    %c0_26 = arith.constant 0 : index
    %c0_27 = arith.constant 0 : index
    %45 = vector.load %arg10[%c0_25, %c0_26, %c0_27] : memref<1x8x128xf32, #tpu.memory_space<vmem>>, vector<1x8x128xf32>
    %46 = vector.shape_cast %45 : vector<1x8x128xf32> to vector<8x128xf32>
    %47 = vector.shape_cast %44 : vector<8x128xf32> to vector<1x8x128xf32>
    tpu.vector_store %arg10[%c0_25, %c0_26, %c0_27], %47 {strides = array<i32>} : memref<1x8x128xf32, #tpu.memory_space<vmem>>, vector<1x8x128xf32>,
    return
  }
  func.func @transform_0(%arg0: i32, %arg1: i32) -> (i32, i32) {
    %c0_i32 = arith.constant 0 : i32
    %c0_i32_0 = arith.constant 0 : i32
    return %arg0, %c0_i32 : i32, i32
  }
  func.func @transform_1(%arg0: i32, %arg1: i32) -> (i32, i32, i32) {
    %c0_i32 = arith.constant 0 : i32
    %c0_i32_0 = arith.constant 0 : i32
    return %arg1, %arg0, %c0_i32 : i32, i32, i32
  }
  func.func @transform_2(%arg0: i32, %arg1: i32) -> (i32, i32) {
    %c0_i32 = arith.constant 0 : i32
    %c0_i32_0 = arith.constant 0 : i32
    %c0_i32_1 = arith.constant 0 : i32
    return %c0_i32, %c0_i32_0 : i32, i32
  }
  func.func @transform_3(%arg0: i32, %arg1: i32) -> (i32, i32) {
    %c0_i32 = arith.constant 0 : i32
    %c0_i32_0 = arith.constant 0 : i32
    %c0_i32_1 = arith.constant 0 : i32
    return %c0_i32, %c0_i32_0 : i32, i32
  }
  func.func @transform_4(%arg0: i32, %arg1: i32) -> (i32, i32) {
    %c0_i32 = arith.constant 0 : i32
    %c0_i32_0 = arith.constant 0 : i32
    %c0_i32_1 = arith.constant 0 : i32
    return %c0_i32, %c0_i32_0 : i32, i32
  }
  func.func @transform_5(%arg0: i32, %arg1: i32) -> (i32, i32) {
    %c0_i32 = arith.constant 0 : i32
    %c0_i32_0 = arith.constant 0 : i32
    %c0_i32_1 = arith.constant 0 : i32
    return %c0_i32, %c0_i32_0 : i32, i32
  }
  func.func @transform_6(%arg0: i32, %arg1: i32) -> (i32, i32) {
    %c0_i32 = arith.constant 0 : i32
    %c0_i32_0 = arith.constant 0 : i32
    %c0_i32_1 = arith.constant 0 : i32
    return %c0_i32, %c0_i32_0 : i32, i32
  }
  func.func @transform_7(%arg0: i32, %arg1: i32) -> (i32, i32) {
    %c0_i32 = arith.constant 0 : i32
    %c0_i32_0 = arith.constant 0 : i32
    %c0_i32_1 = arith.constant 0 : i32
    return %c0_i32, %c0_i32_0 : i32, i32
  }
  func.func @transform_8(%arg0: i32, %arg1: i32) -> (i32, i32, i32) {
    %c0_i32 = arith.constant 0 : i32
    %c0_i32_0 = arith.constant 0 : i32
    return %arg1, %arg0, %c0_i32 : i32, i32, i32
  }
}

</mosaic_0001>

<bundles_post_ra>
// kernel: tpu_custom_call.1
= control target key start
LH: loop header
LB: loop body
LE: loop exit
PB: predicated region body
PF: predicated region fallthrough
CT: control target
= control target key end

     0   :  { %s1622_s0 = inlined_call_operand.hbm [shape: f32[16,32], index: 0, kind: input, shape index: {}]   ;;  %s1623_s1 = inlined_call_operand.hbm [shape: f32[8,16,16], index: 1, kind: input, shape index: {}]   ;;  %s1624_s2 = inlined_call_operand.hbm [shape: f32[32,64], index: 2, kind: input, shape index: {}]   ;;  %s1625_s3 = inlined_call_operand.hbm [shape: f32[16,96], index: 3, kind: input, shape index: {}]   ;;  %s1626_s4 = inlined_call_operand.hbm [shape: f32[32,32], index: 4, kind: input, shape index: {}]   ;;  %s1627_s5 = inlined_call_operand.hbm [shape: f32[32,128], index: 5, kind: input, shape index: {}]   ;;  %s1628_s6 = inlined_call_operand.vmem [shape: f32[1,96], index: 6, kind: input, shape index: {}]   ;;  %s1629_s7 = inlined_call_operand.vmem [shape: f32[1,128], index: 7, kind: input, shape index: {}]   ;;  %s1630_s8 = inlined_call_operand.hbm [shape: f32[8,16,128], index: 8, kind: output, shape index: {}]  }
   0x1   :  { %1641 = sst [smem:[#allocation29_spill]] %s1622_s0 }
   0x2   :  { %1642 = sst [smem:[#allocation30_spill]] %s1624_s2 }
   0x3   :  { %1643 = sst [smem:[#allocation31_spill]] %s1625_s3 }
   0x4   :  { %1644 = sst [smem:[#allocation32_spill]] %s1626_s4 }
   0x5   :  { %1645 = sst [smem:[#allocation33_spill]] %s1627_s5 }
   0x6   :  { %1646 = sst [smem:[#allocation34_spill]] %s1628_s6 }
   0x7   :  { %1647 = sst [smem:[#allocation35_spill]] %s1629_s7 }
   0x8   :  { %1648 = sst [smem:[#allocation36_spill]] %s1630_s8 }
   0x9   :  { %13 = vsyncpa [#allocation4], 0 }
   0xa   :  { %15 = vsyncpa [#allocation4 + $0x1], 0 }
   0xb   :  { %16 = vsyncpa [#allocation7], 0 }
   0xc   :  { %18 = vsyncpa [#allocation7 + $0x1], 0 }
   0xd   :  { %19 = vsyncpa [#allocation10], 0 }
   0xe   :  { %20 = vsyncpa [#allocation13], 0 }
   0xf   :  { %21 = vsyncpa [#allocation5], 0 }
  0x10   :  { %23 = vsyncpa [#allocation5 + $0x1], 0  ;;  %s1348_s27 = smov 0   ;;  %s1350_s28 = smov 0  }
  0x11   :  { %s1352_s29 = smov 0   ;;  %s1354_s30 = smov 0  }
  0x12   :  { %s1356_s9 = smov 0   ;;  %s1358_s10 = smov 0  }
  0x13   :  { %s1360_s11 = smov 0   ;;  %s1362_s12 = smov 0  }
  0x14   :  { %s1364_s13 = smov 0   ;;  %s1366_s14 = smov 0  }
  0x15   :  { %s1368_s15 = smov 0  }
  0x16 LB: > { %1649 = sst [smem:[#allocation21_spill]] %s1252_s27  ;;  %s1404_s16 = sadd.s32 4294967295, %s1292_s15   ;;  %s1292_s15 = sphi %s1368_s15, %s29_s15   ;;  %s1288_s14 = sphi %s1366_s14, %s1697_s14   ;;  %s1284_s13 = sphi %s1364_s13, %s1696_s13   ;;  %s1280_s12 = sphi %s1362_s12, %s1695_s12   ;;  %s1276_s11 = sphi %s1360_s11, %s1694_s11   ;;  %s1272_s10 = sphi %s1358_s10, %s1693_s10   ;;  %s1268_s9 = sphi %s1356_s9, %s1692_s9   ;;  %s1264_s30 = sphi %s1354_s30, %s1691_s30   ;;  %s1260_s29 = sphi %s1352_s29, %s1690_s29   ;;  %s1256_s28 = sphi %s1350_s28, %s1689_s28   ;;  %s1252_s27 = sphi %s1348_s27, %s1688_s27  }
  0x17   : > { %1650 = sst [smem:[#allocation22_spill]] %s1276_s11  ;;  %p783_p0 = scmp.ge.s32.totalorder %s1292_s15, 1 }
  0x18   : > { %1651 = sst [smem:[#allocation23_spill]] %s1280_s12  ;;  %p1632_p1 = scmp.eq.s32.totalorder %s1404_s16, 0 }
  0x19   : > { %p254_p2 = scmp.lt.s32.totalorder %s1292_s15, 17  ;;  %s1652_s2 = sld [smem:[#allocation30_spill]] }
  0x1a   : > { %s1294_s21 = smov [#allocation8]   ;;  %s1655_s3 = sld [smem:[#allocation31_spill]] }
  0x1b   : > { %p1412_p3 = pnand %p783_p0, %p254_p2  ;;  %s267_s22 = sshll.u32 %s1294_s21, 4  ;;  %s268_s22 = int_to_ptr.vmem [resolvable:$true] %s267_s22 }
  0x1c   : > { %s1295_s17 = smov 128   ;;  %s1296_s18 = smov 8  }
  0x1d   : > { %p835_p4 = pneg %p1412_p3  ;;  %s1297_s21 = smov [#allocation9]  }
  0x1e   : > { %s1656_s4 = sld [smem:[#allocation32_spill]]  ;;  %s1298_s25 = smov [#allocation11]  }
  0x1f   : > { %s265_s19 = sshll.u32 %s1652_s2, 4  ;;  %p1420_p5 = pnand %p835_p4, %p1632_p1  ;;  %s266_s19 = int_to_ptr.hbm [resolvable:$true] %s265_s19 }
  0x20   : > { %s279_s26 = sshll.u32 %s1655_s3, 4  ;;  %s281_s2 = sshll.u32 %s1297_s21, 4  ;;  %s280_s26 = int_to_ptr.hbm [resolvable:$true] %s279_s26  ;;  %s282_s2 = int_to_ptr.vmem [resolvable:$true] %s281_s2 }
  0x21   : > { %838 = dma.hbm_to_vmem [thread:$0]  (!%p1420_p5), %s266_s19, 512, %s268_s22, [#allocation7], %s1295_s17, %s1295_s17, %s1296_s18  }
  0x22   : > { %841 = dma.hbm_to_vmem [thread:$0]  (!%p1420_p5), %s280_s26, 256, %s282_s2, [#allocation10], %s1295_s17, %s1295_s17, %s1296_s18  }
  0x23   : > { %s1657_s5 = sld [smem:[#allocation33_spill]]  ;;  %s295_s7 = sshll.u32 %s1298_s25, 4  ;;  %s296_s7 = int_to_ptr.vmem [resolvable:$true] %s295_s7 }
  0x24   : > { %s293_s12 = sshll.u32 %s1656_s4, 4  ;;  %s1299_s8 = smov [#allocation12]   ;;  %s294_s12 = int_to_ptr.hbm [resolvable:$true] %s293_s12 }
  0x25   : > { %844 = dma.hbm_to_vmem [thread:$0]  (!%p1420_p5), %s294_s12, 512, %s296_s7, [#allocation10], %s1295_s17, %s1295_s17, %s1296_s18  }
  0x26   : > { %s309_s21 = sshll.u32 %s1299_s8, 4  ;;  %s41_s2 = sadd.s32 1, %s1288_s14  ;;  %s310_s21 = int_to_ptr.vmem [resolvable:$true] %s309_s21 }
  0x27   : > { %p55_p6 = scmp.ne.s32.totalorder %s1272_s10, %s1268_s9  ;;  %p56_p7 = scmp.eq.s32.totalorder %s1292_s15, 0 }
  0x28   : > { %p61_p8 = scmp.ne.s32.totalorder %s1268_s9, %s1264_s30  ;;  %p863_p9 = scmp.lt.s32.totalorder %s1292_s15, 16 }
  0x29   : > { %s307_s22 = sshll.u32 %s1657_s5, 4  ;;  %p57_p10 = por %p56_p7, %p55_p6  ;;  %s308_s22 = int_to_ptr.hbm [resolvable:$true] %s307_s22 }
  0x2a   : > { %847 = dma.hbm_to_vmem [thread:$0]  (!%p1420_p5), %s308_s22, 512, %s310_s21, [#allocation13], %s1295_s17, %s1295_s17, %s1296_s18  }
  0x2b   : > { %s329_s24 = sand.u32 1, %s1272_s10   ;;  %p1454_p11 = por %p1632_p1, %p61_p8 }
  0x2c   : > { %s789_s23 = sshll.u32 %s329_s24, 3  ;;  %s790_s17 = sshll.u32 %s1288_s14, 3 }
  0x2d   : > { %s1659_s0 = sld [smem:[#allocation29_spill]]  ;;  %s333_s25 = scalar_lea.vmem [#allocation3], %s789_s23 }
  0x2e   : > { %s341_s7 = sshll.u32 %s333_s25, 4  ;;  %p849_p12 = pnand %p863_p9, %p57_p10  ;;  %s342_s7 = int_to_ptr.vmem [resolvable:$true] %s341_s7 }
  0x2f   : > { %s330_s8 = scalar_lea.sflag [#allocation4], %s329_s24  ;;  %s782_s21 = sadd.s32 4294967294, %s1292_s15  }
  0x30   : > { %s38_s26 = sadd.s32 1, %s1284_s13  ;;  %p83_p0 = scmp.ne.s32.totalorder %s1260_s29, %s1256_s28 }
  0x31   : > { %p39_p13 = scmp.ge.s32.totalorder %s38_s26, 8  ;;  %p89_p2 = scmp.ne.s32.totalorder %s1256_s28, %s1252_s27 }
  0x32   : > { %p1478_p4 = por %p83_p0, %p56_p7  ;;  %p241_p8 = scmp.eq.s32.totalorder %s1404_s16, 15 }
  0x33   : > { %s337_s19 = scalar_lea.hbm %s1659_s0, %s790_s17  ;;  %s76_s17 = sadd.s32 1, %s1260_s29 }
  0x34   : > { %s339_s22 = sshll.u32 %s337_s19, 4  ;;  %s1699_s26 = smov (%p39_p13, %s38_s26), 0  ;;  %s340_s22 = int_to_ptr.hbm [resolvable:$true] %s339_s22 }
  0x35   : > { %851 = dma.hbm_to_vmem [thread:$0]  (!%p849_p12), %s340_s22, 128, %s342_s7, %s330_s8  }
  0x36   : > { %1660 = sst [smem:[#allocation24_spill]] %s1699_s26  ;;  %s1701_s2 = smov (!%p39_p13, %s41_s2), %s1288_s14 }
  0x37   : > { %s71_s23 = ssub.s32 %s1284_s13, %s1699_s26  ;;  %p43_p5 = scmp.ge.s32.totalorder %s1701_s2, 2 }
  0x38   : > { %p1484_p6 = por %p89_p2, %p1632_p1  ;;  %p247_p10 = scmp.eq.s32.totalorder %s782_s21, 15 }
  0x39   : > { %s1703_s2 = smov (%p43_p5, %s1701_s2), 0  ;;  %p1491_p12 = por %p241_p8, %p83_p0 }
  0x3a   : > { %s1662_s18 = scalar_select %p1484_p6, 1, 0 }
  0x3b   : > { %1664 = sst [smem:[#allocation26_spill]] %s1703_s2  ;;  %p1495_p7 = por %p247_p10, %p89_p2 }
  0x3c   : > { %1663 = sst [smem:[#allocation25_spill]] %s1662_s18  ;;  %s45_s22 = ssub.s32 %s1288_s14, %s1703_s2 }
  0x3d   : > { %s1665_s30 = scalar_select %p1491_p12, 1, 0 }
  0x3e   : > { %s1667_s19 = scalar_select %p1495_p7, 1, 0 }
  0x3f   : > { %1666 = sst [smem:[#allocation27_spill]] %s1665_s30  ;;  %s348_s25 = sand.u32 1, %s1292_s15  }
  0x40   : > { %1668 = sst [smem:[#allocation28_spill]] %s1667_s19  ;;  %p46_p13 = scmp.eq.s32.totalorder %s45_s22, 0 }
  0x41   : > { %s73_s7 = sor.u32 %s71_s23, %s45_s22  ;;  %s1669_s8 = sadd.s32 1, %s1272_s10 }
  0x42   : > { %p74_p1 = scmp.eq.s32.totalorder %s73_s7, 0  ;;  %s350_s3 = sand.u32 1, %s1260_s29  }
  0x43   : > { %s1505_s21 = scalar_select %p46_p13, %s1272_s10, %s1669_s8  }
  0x44   : > { %s1508_s0 = scalar_select %p74_p1, %s1260_s29, %s76_s17  }
  0x45   : > { %s792_s4 = sshll.u32 %s1284_s13, 1  ;;  %s791_s5 = sshll.u32 %s350_s3, 3 }
  0x46   : > { %s356_s26 = sadd.s32 %s1288_s14, %s792_s4  ;;  %s352_s19 = scalar_lea.vmem [#allocation6], %s791_s5 }
  0x47   : > { %s793_s27 = sshll.u32 %s356_s26, 3  ;;  %s362_s11 = sshll.u32 %s352_s19, 4  ;;  %s363_s11 = int_to_ptr.vmem [resolvable:$true] %s362_s11 }
  0x48   : > { %s358_s2 = scalar_lea.hbm %s1623_s1, %s793_s27  ;;  %p852_p0 = pnand %p863_p9, %p1478_p4 }
  0x49   : > { %s360_s18 = sshll.u32 %s358_s2, 4  ;;  %s349_s23 = scalar_lea.sflag [#allocation7], %s348_s25  ;;  %s361_s18 = int_to_ptr.hbm [resolvable:$true] %s360_s18 }
  0x4a   : > { %854 = dma.hbm_to_vmem [thread:$0]  (!%p852_p0), %s361_s18, 128, %s363_s11, %s349_s23  }
  0x4b   : > { %371 = sbr.rel (%p1412_p3) target bundleno = 790 (0x316), region = 52  ;;  %s373_s3 = sand.u32 (!%p1412_p3), 1, %s1268_s9  }
  0x4c   : > { %s795_s4 = sshll.u32 (!%p1412_p3), %s373_s3, 3  ;;  %s374_s26 = scalar_lea.sflag (!%p1412_p3), [#allocation4], %s373_s3 }
  0x4d   : > { %s377_s6 = scalar_lea.vmem (!%p1412_p3), [#allocation3], %s795_s4 }
  0x50   : > { %1227 = dma.done.wait (%p1454_p11), %s374_s26, 128  }
  0x51   : > { %1229 = vsyncadd (%p1454_p11), %s374_s26, 4294967168  ;;  %s383_s27 = sand.u32 1, %s1404_s16   ;;  %s385_s11 = sand.u32 1, %s1256_s28  }
  0x52   : > { %s1531_s20 = sshll.u32 %s385_s11, 3  ;;  %s384_s2 = scalar_lea.sflag [#allocation7], %s383_s27 }
  0x53   : > { %s387_s17 = scalar_lea.vmem [#allocation6], %s1531_s20 }
  0x54   : > { %1231 = dma.done.wait (%p1484_p6), %s384_s2, 128  }
  0x55   : > { %1233 = vsyncadd (%p1484_p6), %s384_s2, 4294967168  ;;  %p1671_p1 = scmp.eq.s32.totalorder %s1404_s16, 0 }
  0x57   : > { %1235 = dma.done.wait (%p1671_p1), [#allocation7], 512   ;;  %p1672_p3 = pmov %p1671_p1 }
  0x58   : > { %p1673_p9 = pmov %p1671_p1 }
  0x59   : > { %1237 = vsyncadd (%p1672_p3), [#allocation7], 4294966784 }
  0x5a   : > { %1239 = dma.done.wait (%p1673_p9), [#allocation10], 768   ;;  %p1674_p11 = pmov %p1671_p1 }
  0x5b   : > { %p1675_p2 = pmov %p1671_p1 }
  0x5c   : > { %1241 = vsyncadd (%p1674_p11), [#allocation10], 4294966528 }
  0x5d   : > { %1243 = dma.done.wait (%p1675_p2), [#allocation13], 512   ;;  %p1676_p4 = pmov %p1671_p1 }
  0x5e   : > { %s445_s12 = scalar_lea.vmem [#allocation14], %s1531_s20  ;;  %s1677_s24 = sld [smem:[#allocation22_spill]] }
  0x5f   : > { %1245 = vsyncadd (%p1676_p4), [#allocation13], 4294966784 }
  0x64   : > { %p802_p5 = scmp.ne.s32.totalorder %s1677_s24, 0 }
  0x66   : > { %449 = sbr.rel (%p802_p5) target bundleno = 109 (0x6d), region = 80 }
  0x6b   : > { %v450_v0 = vld [vmem:[%s377_s6] sm:$0xff]  ;;  %vm451_vm0 = vcmask 261120  }
  0x6c   : > { %452 = vst.msk [vmem:[#allocation2] sm:$0xff] %vm451_vm0, %v450_v0 }
  0x6d PF: > { %v488_v1 = vld [vmem:[#allocation8 + $0x18] sm:$0xff]  ;;  %v456_v2 = vld [vmem:[#allocation9 + $0x8] sm:$0xff]  ;;  %v487_v3 = vld [vmem:[#allocation8 + $0x10] sm:$0xff]  ;;  %vm461_vm1 = vcmask 130048   ;;  %s1300_s16 = smov 32   ;;  %vm489_vm2 = vcmask 261120   ;;  %v611_v47 = vlaneseq }
  0x6e   : > { %505 = vmatpush.msra.mxu1 %v488_v1  ;;  %479 = vmatpush.msra.mxu0 %v456_v2  ;;  %v455_v4 = vld [vmem:[#allocation9] sm:$0xff]  ;;  %v454_v5 = vld [vmem:[%s387_s17] sm:$0xff]  ;;  %v486_v6 = vld [vmem:[#allocation8 + $0x8] sm:$0xff]  ;;  %s1678_s19 = sld [smem:[#allocation34_spill]]  ;;  %s1301_s22 = smov 64  }
  0x6f   : > { %v485_v8 = vld [vmem:[#allocation8] sm:$0xff]  ;;  %v536_v9 = vld [vmem:[#allocation11 + $0x18] sm:$0xff]  ;;  %v534_v11 = vld [vmem:[#allocation11 + $0x8] sm:$0xff]  ;;  %s1679_s25 = sld [smem:[#allocation22_spill]]  ;;  %s1302_s8 = smov 96   ;;  %v612_v49 = vand.u32 127, %v611_v47 }
  0x70   : > { %506 = vmatpush.msra.mxu1 %v487_v3  ;;  %480 = vmatpush.msra.mxu0 %v455_v4  ;;  %v535_v10 = vld [vmem:[#allocation11 + $0x10] sm:$0xff]  ;;  %v533_v13 = vld [vmem:[#allocation11] sm:$0xff]  ;;  %v584_v36 = vld [vmem:[#allocation12 + $0x18] sm:$0xff]  ;;  %s1680_s7 = sld [smem:[#allocation23_spill]]  ;;  %s632_s18 = sshll.u32 %s445_s12, 4  ;;  %s633_s18 = int_to_ptr.vmem [resolvable:$true] %s632_s18 }
  0x71   : > { %803 = vmatmul.msk.f32.vlgmr.msra.gmra.mxu0 %vm461_vm1, %v454_v5  ;;  %556 = vmatpush.msra.mxu2 %v536_v9  ;;  %v583_v37 = vld [vmem:[#allocation12 + $0x10] sm:$0xff]  ;;  %v582_v38 = vld [vmem:[#allocation12 + $0x8] sm:$0xff]  ;;  %v581_v39 = vld [vmem:[#allocation12] sm:$0xff]  ;;  %s1681_s5 = sld [smem:[#allocation35_spill]]  ;;  %vm613_vm7 = vcmp.lt.s32.totalorder %v612_v49, 8 }
  0x72   : > { %507 = vmatpush.msra.mxu1 %v486_v6  ;;  %603 = vmatpush.msra.mxu3 %v584_v36  ;;  %s1682_s17 = sld [smem:[#allocation36_spill]] }
  0x73   : > { %v453_v7 = vld [vmem:[#allocation2] sm:$0xff]  ;;  %557 = vmatpush.msra.mxu2 %v535_v10 }
  0x74   : > { %571 = vrot.lane.b32.xlu1 %v453_v7, %s1300_s16  ;;  %508 = vmatpush.msra.mxu1 %v485_v8  ;;  %v966_v12 = vld [vmem:[%s1678_s19] ss:$0 sm:$0xff]  ;;  %s618_s19 = scalar_lea.sflag [#allocation5], %s385_s11 }
  0x75   : > { %804 = vmatmul.msk.f32.vlgmr.msra.gmra.mxu1 %vm489_vm2, %v453_v7  ;;  %558 = vmatpush.msra.mxu2 %v534_v11  ;;  %s809_s23 = sshll.u32 %s1679_s25, 1 }
  0x76   : > { %604 = vmatpush.msra.mxu3 %v583_v37  ;;  %s628_s3 = sadd.s32 %s1680_s7, %s809_s23 }
  0x77   : > { %559 = vmatpush.msra.mxu2 %v533_v13  ;;  %s810_s4 = sshll.u32 %s628_s3, 3  ;;  %v967_v48 = vld [vmem:[%s1681_s5] ss:$0 sm:$0xff] }
  0x78   : > { %605 = vmatpush.msra.mxu3 %v582_v38  ;;  %s630_s24 = scalar_lea.hbm %s1682_s17, %s810_s4  ;;  %s1174_s23 = scalar_lea.hbm %s1682_s17, 128 }
  0x79   : > { %s634_s30 = sshll.u32 %s630_s24, 4  ;;  %s635_s30 = int_to_ptr.hbm [resolvable:$true] %s634_s30 }
  0x7a   : > { %606 = vmatpush.msra.mxu3 %v581_v39 }
  0xe6   : > { %v572_v41 = vpop.permute.xlu1 %571 }
  0xee   : > { %v482_v14 = vpop.f32.mrf.mxu0 }
  0xef   : > { %v483_v15 = vadd.f32 %v966_v12, %v482_v14 }
  0xf1   : > { %538 = vrot.lane.b32.xlu0 %v483_v15, %s1301_s22  ;;  %s1168_s22 = sshra.s32 %s635_s30, 4  ;;  %s1169_s22 = int_to_ptr.hbm [resolvable:$true] %s1168_s22 }
  0xf2   : > { %v510_v16 = vpop.f32.mrf.mxu1  ;;  %s1170_s25 = scalar_lea.hbm %s1169_s22, 8  ;;  %p1175_p13 = scmp.lt.s32.totalorder %s1169_s22, %s1682_s17 }
  0xf3   : > { %v511_v17 = vadd.f32 %v510_v16, %v483_v15  ;;  %p1171_p6 = scmp.ne.s32.totalorder %s1169_s22, %s1170_s25  ;;  %p1176_p0 = scmp.lt.s32.totalorder %s1174_s23, %s1170_s25 }
  0xf5   : > { %v805_v18 = vmul.f32 -1.442695, %v511_v17  ;;  %p1172_p8 = pnand %p1171_p6, %p1491_p12  ;;  %p1177_p1 = por %p1176_p0, %p1175_p13 }
  0xf7   : > { %968 = vpow2.f32 %v805_v18  ;;  %p1173_p10 = pneg %p1172_p8 }
  0xf9   : > { %p1178_p3 = pnand %p1177_p1, %p1173_p10 }
  0xfd   : > { %v969_v19 = vpop.eup %968 }
  0xfe   : > { %v516_v20 = vadd.f32 1.0, %v969_v19 }
 0x100   : > { %970 = vrcp.f32 %v516_v20  ;;  %v528_v24 = vand.u32 2147483648, %v516_v20  ;;  %v526_v26 = vand.u32 2147483647, %v516_v20  ;;  %vm522_vm4 = vweird.f32 %v516_v20 }
 0x102   : > { %v529_v28 = vor.u32 1.1754944e-38, %v528_v24  ;;  %vm527_vm6 = vcmp.eq.f32.partialorder %v526_v26, 8.507059e+37 }
 0x106   : > { %v971_v21 = vpop.eup %970 }
 0x107   : > { %v518_v22 = vmul.f32 %v971_v21, %v516_v20  ;;  %vm523_vm3 = vweird.f32 %v971_v21 }
 0x108   : > { %vm524_vm5 = vmor %vm522_vm4, %vm523_vm3 }
 0x109   : > { %v519_v23 = vsub.f32 1.0, %v518_v22 }
 0x10b   : > { %v520_v25 = vmul.f32 %v971_v21, %v519_v23 }
 0x10d   : > { %v521_v27 = vadd.f32 %v971_v21, %v520_v25 }
 0x10f   : > { %v525_v29 = vsel %vm524_vm5, %v971_v21, %v521_v27 }
 0x110   : > { %v530_v30 = vsel %vm527_vm6, %v529_v28, %v525_v29 }
 0x111   : > { %v532_v31 = vmul.f32 %v530_v30, %v453_v7  ;;  %v570_v40 = vsub.f32 1.0, %v530_v30 }
 0x113   : > { %806 = vmatmul.msk.f32.vlgmr.msra.gmra.mxu2 %vm489_vm2, %v532_v31  ;;  %v574_v43 = vmul.f32 %v572_v41, %v570_v40 }
 0x163   : > { %v539_v32 = vpop.permute.xlu0 %538 }
 0x196   : > { %v561_v33 = vpop.f32.mrf.mxu2 }
 0x197   : > { %v562_v34 = vadd.f32 %v561_v33, %v539_v32 }
 0x199   : > { %972 = vtanh.f32 %v562_v34 }
 0x19f   : > { %v973_v35 = vpop.eup %972 }
 0x1a0   : > { %566 = vrot.lane.b32.xlu0 %v973_v35, %s1300_s16 }
 0x212   : > { %v567_v42 = vpop.permute.xlu0 %566 }
 0x213   : > { %v569_v44 = vmul.f32 %v567_v42, %v530_v30 }
 0x215   : > { %v575_v45 = vadd.f32 %v574_v43, %v569_v44 }
 0x217   : > { %577 = vrot.lane.b32.xlu1 %v575_v45, %s1302_s8 }
 0x289   : > { %v578_v46 = vpop.permute.xlu1 %577 }
 0x28a   : > { %580 = vst.msk [vmem:[#allocation2] sm:$0xff] %vm489_vm2, %v578_v46  ;;  %807 = vmatmul.msk.f32.vlgmr.msra.gmra.mxu3 %vm489_vm2, %v578_v46 }
 0x30d   : > { %v608_v50 = vpop.f32.mrf.mxu3 }
 0x30e   : > { %v609_v51 = vadd.f32 %v967_v48, %v608_v50 }
 0x310   : > { %v614_v52 = vmax.f32 %v609_v51, 0.0 }
 0x312   : > { %v615_v53 = vsel %vm613_vm7, %v614_v52, %v609_v51 }
 0x313   : > { %616 = vst [vmem:[%s445_s12] sm:$0xff] %v615_v53 }
 0x314   : > { %1181 = shalt.err (!%p1178_p3)
}
 0x315   : > { %833 = dma.vmem_to_hbm [thread:$0]  (%p1491_p12), %s633_s18, 128, %s635_s30, %s618_s19  }
 0x316 PF: > { %s1684_s11 = sld [smem:[#allocation21_spill]]  ;;  %p868_p9 = scmp.ge.s32.totalorder %s1292_s15, 2 }
 0x318   : > { %p856_p11 = pnand %p868_p9, %p1495_p7 }
 0x31a   : > { %p857_p2 = pneg %p856_p11 }
 0x31c   : > { %s646_s12 = sand.u32 1, %s1684_s11  }
 0x31d   : > { %s647_s26 = scalar_lea.sflag [#allocation5], %s646_s12 }
 0x31e   : > { %1247 = dma.done.wait (%p857_p2), %s647_s26, 128  }
 0x31f   : > { %1249 = vsyncadd (%p857_p2), %s647_s26, 4294967168  ;;  %s29_s15 = sadd.s32 1, %s1292_s15   ;;  %s1686_s6 = sld [smem:[#allocation24_spill]] }
 0x320   : > { %p26_p4 = scmp.ge.s32.totalorder %s29_s15, 18   ;;  %s1687_s5 = sld [smem:[#allocation26_spill]] }
 0x321   : > { %s1688_s27 = smov %s1256_s28  ;;  %s1689_s28 = smov %s1260_s29 }
 0x322   : > { %s1690_s29 = smov %s1508_s0  ;;  %s1691_s30 = smov %s1268_s9 }
 0x323   : > { %s1692_s9 = smov %s1272_s10  ;;  %s1693_s10 = smov %s1505_s21 }
 0x324   : > { %s1694_s11 = smov %s1284_s13  ;;  %s1695_s12 = smov %s1288_s14 }
 0x325   : > { %s1696_s13 = smov %s1686_s6  ;;  %28 = sbr.rel (!%p26_p4) target bundleno = 22 (0x16), region = 130 }
 0x326   : > { %s1697_s14 = smov %s1687_s5 }
 0x32a   :  { %653 = vsyncpa [#allocation4], 1 }
 0x32b   :  { %655 = vsyncpa [#allocation4 + $0x1], 1 }
 0x32c   :  { %656 = vsyncpa [#allocation7], 1 }
 0x32d   :  { %658 = vsyncpa [#allocation7 + $0x1], 1 }
 0x32e   :  { %659 = vsyncpa [#allocation10], 1 }
 0x32f   :  { %660 = vsyncpa [#allocation13], 1 }
 0x330   :  { %661 = vsyncpa [#allocation5], 1 }
 0x331   :  { %663 = vsyncpa [#allocation5 + $0x1], 1 }

</bundles_post_ra>
